<compile_context>
chip_gen: v6e
topology: v6e:2x2x1
jax: 0.10.0
libtpu: 0.0.40
codegen_flags: <defaults>
</compile_context>

<pallas_src>
import functools

import jax
import jax.numpy as jnp
from jax import lax
from jax.experimental import pallas as pl
from jax.experimental.pallas import tpu as pltpu

LANE = 128
F32 = jnp.float32
BF16 = jnp.bfloat16


def _ceil_to(x, m):
    return ((x + m - 1) // m) * m


def _pick_tile(total, want):
    """Largest multiple-of-128 tile <= want that divides total (total % 128 == 0)."""
    t = max(LANE, (min(want, total) // LANE) * LANE)
    while total % t:
        t -= LANE
    return t


def _pad2(x, rows, cols):
    x = jnp.asarray(x, F32)
    return jnp.pad(x, ((0, rows - x.shape[0]), (0, cols - x.shape[1])))


@functools.lru_cache(maxsize=None)
def _vmem_limit_bytes():
    # Per-generation VMEM budget: ~3/4 of physical capacity (v7x: ~48 MiB,
    # v5e/v6e: ~96 MiB), leaving headroom for compiler scratch / double buffers.
    cap = 128 * 1024 * 1024
    try:
        cap = int(pltpu.get_tpu_info().vmem_capacity_bytes)
    except Exception:
        pass
    return int(min(cap * 3 // 4, 100 * 1024 * 1024))


# ----------------------------------------------------------------------------
# embedding_h : nn.Linear(in_dim, hidden_dim), tiled over nodes
# ----------------------------------------------------------------------------
def _linear_kernel(x_ref, w_ref, b_ref, o_ref):
    # Big MXU operands in bf16 (weight pre-cast on host), f32 accumulate + bias.
    o_ref[...] = (
        jnp.dot(x_ref[...].astype(BF16), w_ref[...], preferred_element_type=F32)
        + b_ref[...]
    )


def linear(x, w_bf16, b, *, n_tile=512):
    n_p, c_in = x.shape
    c_out = w_bf16.shape[1]
    n_tile = _pick_tile(n_p, n_tile)
    return pl.pallas_call(
        _linear_kernel,
        out_shape=jax.ShapeDtypeStruct((n_p, c_out), F32),
        grid_spec=pltpu.PrefetchScalarGridSpec(
            num_scalar_prefetch=0,
            grid=(n_p // n_tile,),
            in_specs=[
                pl.BlockSpec((n_tile, c_in), lambda i: (i, 0)),
                pl.BlockSpec((c_in, c_out), lambda i: (0, 0)),
                pl.BlockSpec((1, c_out), lambda i: (0, 0)),
            ],
            out_specs=pl.BlockSpec((n_tile, c_out), lambda i: (i, 0)),
        ),
        compiler_params=pltpu.CompilerParams(
            dimension_semantics=("parallel",),
            vmem_limit_bytes=_vmem_limit_bytes(),
        ),
    )(x, w_bf16, b)


# ----------------------------------------------------------------------------
# Fused GMMLayer body (+ its pseudo_proj Linear(2, dim) -> Tanh)
# Produces per-core partial aggregations; BN/ReLU/residual happen in the epilogue.
# ----------------------------------------------------------------------------
def _gmm_layer_kernel(
    src_ref, dst_ref, ps_ref, h_ref, fcw_ref, wp_ref, ab_ref, vec_ref,  # inputs
    part_ref,                                                           # per-core partial (output)
    hfc_ref,                                                            # scratch
    *, kernels, c_out_p,
):
    e_t = src_ref.shape[0]
    n_p = h_ref.shape[0]
    e_step = pl.program_id(1)

    @pl.when(e_step == 0)
    def _init():
        # fc: Linear(C_in, K*C_out, bias=False) in bf16 on the MXU, f32 accumulate,
        # computed once per core and kept resident in VMEM (bf16).
        hfc_ref[...] = jnp.dot(
            h_ref[...], fcw_ref[...], preferred_element_type=F32
        ).astype(BF16)
        part_ref[...] = jnp.zeros_like(part_ref)

    # pseudo_proj: tanh(Linear(2, dim)(pseudo))   (padded lanes stay exactly 0)
    p = jnp.tanh(
        jnp.dot(ps_ref[...], wp_ref[...], preferred_element_type=F32)
        + vec_ref[0:1, :]
    )                                                       # (e_t, 128)

    # All-K gaussian logits in ONE fused matmul via the quadratic expansion:
    #   logit_k = (p*p) @ (-0.5*isig^2) + p @ (mu*isig^2) - 0.5*sum(mu^2*isig^2)
    q = jnp.concatenate([p * p, p], axis=1)                 # (e_t, 256)
    logits = jnp.dot(q, ab_ref[...], preferred_element_type=F32) + vec_ref[1:2, :]
    w = jnp.exp(logits)                                     # (e_t, 128); first K cols real

    # Gather source-node features onto edges via an in-kernel bf16 selection
    # matrix (no (E, N) one-hots ever hit HBM).  jnp.where(...,1.,0.)->bf16 is the
    # known-good Mosaic lowering for mask materialization.
    # TODO(synk): for very large N replace with an index/DMA gather (hfc in HBM,
    # memory_space=pl.ANY) + dst-sorted segmented scatter; structure stays the same.
    src = src_ref[...]                                      # (e_t, 1) int32
    gsel = jnp.where(
        src == lax.broadcasted_iota(jnp.int32, (e_t, n_p), 1), 1.0, 0.0
    ).astype(BF16)                                          # (e_t, n_p)

    # Weight each K-slice of the gather as it is produced, so only one
    # (e_t, c_out_p) f32 block is live at a time (minimizes vreg pressure / spills).
    msum = (
        jnp.dot(gsel, hfc_ref[:, 0:c_out_p], preferred_element_type=F32)
        * w[:, 0:1]
    )
    for k in range(1, kernels):
        msum = msum + (
            jnp.dot(gsel, hfc_ref[:, k * c_out_p:(k + 1) * c_out_p],
                    preferred_element_type=F32)
            * w[:, k:k + 1]
        )

    # Scatter-add edge messages to destination nodes (aggr_type='sum').
    # Padded edges carry the sentinel dst == n_p and therefore select nothing.
    dst = dst_ref[...]                                      # (1, e_t) int32
    ssel = jnp.where(
        lax.broadcasted_iota(jnp.int32, (n_p, e_t), 0) == dst, 1.0, 0.0
    ).astype(BF16)                                          # (n_p, e_t)
    part_ref[...] += jnp.dot(ssel, msum.astype(BF16), preferred_element_type=F32)


def gmm_layer_partials(h_bf, pseudo_p, src_col, dst_row, fcw, wp, ab, vec2, *,
                       kernels, c_out_p, e_tile, num_cores, tiles_per_core):
    n_p, c_in_p = h_bf.shape
    kc = kernels * c_out_p
    n_tiles = num_cores * tiles_per_core

    kern = functools.partial(_gmm_layer_kernel, kernels=kernels, c_out_p=c_out_p)

    flops = (
        num_cores * 2 * n_p * c_in_p * kc                   # fc(h), once per core
        + n_tiles * (
            2 * e_tile * LANE * LANE                        # pseudo proj
            + 2 * e_tile * (2 * LANE) * LANE                # fused logits
            + kernels * 2 * e_tile * n_p * c_out_p          # gather
            + 2 * n_p * e_tile * c_out_p                    # scatter
        )
    )
    bytes_accessed = (
        2 * (h_bf.size + fcw.size)                          # bf16 operands
        + 4 * (pseudo_p.size + wp.size + ab.size + vec2.size)
        + 4 * (src_col.size + dst_row.size)
        + 4 * num_cores * n_p * c_out_p                     # partial outputs
    )
    cost = pl.CostEstimate(
        flops=int(flops),
        transcendentals=int(n_tiles * e_tile * 2 * LANE),
        bytes_accessed=int(bytes_accessed),
    )

    edge_idx = lambda c, e: c * tiles_per_core + e

    return pl.pallas_call(
        kern,
        out_shape=jax.ShapeDtypeStruct((num_cores, n_p, c_out_p), F32),
        grid_spec=pltpu.PrefetchScalarGridSpec(
            num_scalar_prefetch=0,
            grid=(num_cores, tiles_per_core),
            in_specs=[
                pl.BlockSpec((e_tile, 1), lambda c, e: (edge_idx(c, e), 0)),    # src
                pl.BlockSpec((1, e_tile), lambda c, e: (0, edge_idx(c, e))),    # dst
                pl.BlockSpec((e_tile, LANE), lambda c, e: (edge_idx(c, e), 0)), # pseudo
                # resident, constant-index operands
                # TODO(synk): mark these pipeline_mode=pl.Buffered(1) once verified;
                # default double-buffering wastes VMEM that could buy larger e_tile.
                pl.BlockSpec((n_p, c_in_p), lambda c, e: (0, 0)),   # node features (bf16)
                pl.BlockSpec((c_in_p, kc), lambda c, e: (0, 0)),    # fc weight (bf16)
                pl.BlockSpec((LANE, LANE), lambda c, e: (0, 0)),    # pseudo_proj weight
                pl.BlockSpec((2 * LANE, LANE), lambda c, e: (0, 0)),# stacked logit table
                pl.BlockSpec((2, LANE), lambda c, e: (0, 0)),       # [bias; const] rows
            ],
            out_specs=pl.BlockSpec((None, n_p, c_out_p), lambda c, e: (c, 0, 0)),
            scratch_shapes=[pltpu.VMEM((n_p, kc), BF16)],           # resident fc(h)
        ),
        compiler_params=pltpu.CompilerParams(
            # Inner edge axis is "arbitrary" (it carries the per-core accumulator);
            # the leading "parallel" axis lets v7x's two TensorCores split the edges.
            dimension_semantics=("parallel", "arbitrary"),
            vmem_limit_bytes=_vmem_limit_bytes(),
        ),
        cost_estimate=cost,
    )(src_col, dst_row, pseudo_p, h_bf, fcw, wp, ab, vec2)


# ----------------------------------------------------------------------------
# Epilogue: sum per-core partials, BatchNorm (batch stats), ReLU, residual,
# and explicit zeroing of padded node rows.
# ----------------------------------------------------------------------------
def _gmm_finalize_kernel(part_ref, h_ref, bn_ref, o_ref, *,
                         n_real, batch_norm, residual):
    num_parts = part_ref.shape[0]
    agg = part_ref[0]
    for c in range(1, num_parts):
        agg = agg + part_ref[c]

    if batch_norm:
        # BatchNorm1d forward with batch statistics (training mode), eps=1e-5,
        # biased variance.  Padded rows/cols of agg are exactly zero, so 1/n_real
        # statistics over the full padded block equal the exact statistics.
        inv_n = 1.0 / float(n_real)
        mean = jnp.sum(agg, axis=0, keepdims=True) * inv_n
        ex2 = jnp.sum(agg * agg, axis=0, keepdims=True) * inv_n
        var = ex2 - mean * mean
        agg = (agg - mean) * lax.rsqrt(var + 1e-5) * bn_ref[0:1, :] + bn_ref[1:2, :]

    out = jnp.maximum(agg, 0.0)                             # ReLU
    if residual:
        out = out + h_ref[...]
    # TODO(synk): F.dropout is identity in eval mode; training dropout not modeled.

    n_p = out.shape[0]
    if n_real < n_p:
        # Zero the padded node rows so no garbage ever escapes the layer.
        rows = lax.broadcasted_iota(jnp.int32, (n_p, 1), 0)
        out = jnp.where(rows < n_real, out, 0.0)
    o_ref[...] = out


def gmm_finalize(partials, h_in, bn, *, n_real, batch_norm, residual):
    _, n_p, c_out_p = partials.shape
    kern = functools.partial(_gmm_finalize_kernel, n_real=n_real,
                             batch_norm=batch_norm, residual=residual)
    # TODO(synk): for very large N, tile this over node blocks with a two-pass BN.
    return pl.pallas_call(
        kern,
        out_shape=jax.ShapeDtypeStruct((n_p, c_out_p), F32),
        compiler_params=pltpu.CompilerParams(
            vmem_limit_bytes=_vmem_limit_bytes()),
    )(partials, h_in, bn)


# ----------------------------------------------------------------------------
# One-time parameter padding / packing / casting (hoisted out of the forward)
# ----------------------------------------------------------------------------
def prepare_params(params):
    emb_w = jnp.asarray(params["emb_w"], F32)
    in_dim, hidden = emb_w.shape
    in_p = _ceil_to(in_dim, LANE)
    hid_p = _ceil_to(hidden, LANE)
    prep = {
        "in_dim": in_dim,
        "hidden": hidden,
        "emb_w": _pad2(emb_w, in_p, hid_p).astype(BF16),
        "emb_b": _pad2(jnp.asarray(params["emb_b"]).reshape(1, -1), 1, hid_p),
        "layers": [],
    }
    c_in = hidden
    for lp in params["layers"]:
        mu = jnp.asarray(lp["mu"], F32)
        K, dim = mu.shape
        c_out = lp["gamma"].shape[0]
        assert dim <= LANE and K <= LANE and c_out <= LANE and c_in <= LANE
        c_in_p = _ceil_to(c_in, LANE)
        c_out_p = _ceil_to(c_out, LANE)

        isig2 = jnp.asarray(lp["inv_sigma"], F32) ** 2                  # (K, dim)
        a_tab = _pad2((-0.5 * isig2).T, LANE, LANE)                     # (128, 128)
        b_tab = _pad2((mu * isig2).T, LANE, LANE)                       # (128, 128)
        ab = jnp.concatenate([a_tab, b_tab], axis=0)                    # (256, 128)
        c_tab = _pad2((-0.5 * jnp.sum(mu * mu * isig2, axis=1)).reshape(1, -1),
                      1, LANE)
        bp = _pad2(jnp.asarray(lp["bp"]).reshape(1, -1), 1, LANE)
        vec2 = jnp.concatenate([bp, c_tab], axis=0)                     # (2, 128)
        bn = jnp.concatenate(
            [_pad2(jnp.asarray(lp["gamma"]).reshape(1, -1), 1, LANE),
             _pad2(jnp.asarray(lp["beta"]).reshape(1, -1), 1, LANE)],
            axis=0)                                                     # (2, 128)

        # fc weight padded so each kernel's C_out block is 128-lane aligned; bf16.
        fcw = jnp.asarray(lp["fc_w"], F32).reshape(c_in, K, c_out)
        fcw = jnp.pad(fcw, ((0, c_in_p - c_in), (0, 0), (0, c_out_p - c_out)))
        fcw = fcw.reshape(c_in_p, K * c_out_p).astype(BF16)

        prep["layers"].append(dict(
            wp=_pad2(jnp.asarray(lp["wp"], F32), LANE, LANE),
            ab=ab, vec2=vec2, bn=bn, fcw=fcw,
            K=K, c_in=c_in, c_out=c_out, c_in_p=c_in_p, c_out_p=c_out_p))
        c_in = c_out
    return prep


# ----------------------------------------------------------------------------
# Full MoNet.forward(g, h, pseudo)
# ----------------------------------------------------------------------------
def monet_forward(h, pseudo, src, dst, prep, *, residual=True, batch_norm=True,
                  e_tile=256, num_cores=2):
    assert e_tile % LANE == 0
    n, in_dim = h.shape
    e = src.shape[0]
    assert in_dim == prep["in_dim"]

    n_p = _ceil_to(max(n, 8), LANE)
    in_p = prep["emb_w"].shape[0]

    # Padded node features (zero padding keeps padded lanes / rows inert).
    x = _pad2(h, n_p, in_p)

    # Edge tables; padded edges get src=0 (harmless gather) and the out-of-range
    # sentinel dst=n_p, so they scatter nowhere and contribute nothing.
    e_p = _ceil_to(max(e, 1), num_cores * e_tile)
    tiles_per_core = e_p // (num_cores * e_tile)
    src_col = jnp.zeros((e_p, 1), jnp.int32).at[:e, 0].set(src.astype(jnp.int32))
    dst_row = jnp.full((1, e_p), n_p, jnp.int32).at[0, :e].set(dst.astype(jnp.int32))
    pseudo_p = _pad2(pseudo, e_p, LANE)

    # embedding_h
    h_cur = linear(x, prep["emb_w"], prep["emb_b"])

    c_out = prep["hidden"]
    for lp in prep["layers"]:
        c_in, c_out = lp["c_in"], lp["c_out"]
        partials = gmm_layer_partials(
            h_cur.astype(BF16), pseudo_p, src_col, dst_row,
            lp["fcw"], lp["wp"], lp["ab"], lp["vec2"],
            kernels=lp["K"], c_out_p=lp["c_out_p"], e_tile=e_tile,
            num_cores=num_cores, tiles_per_core=tiles_per_core)
        res_l = residual and (c_in == c_out)   # GMMLayer drops residual if dims differ
        h_cur = gmm_finalize(partials, h_cur, lp["bn"],
                             n_real=n, batch_norm=batch_norm, residual=res_l)

    return h_cur[:n, :c_out]   # g.ndata['h'] = h; return h


# ----------------------------------------------------------------------------
# Deterministic synthetic parameters (shapes follow MoNet.__init__)
# ----------------------------------------------------------------------------
def init_params(key, in_dim, hidden_dim, out_dim, K, dim, n_layers):
    def nrm(k, shape, scale=0.1):
        return scale * jax.random.normal(k, shape, dtype=F32)

    keys = iter(jax.random.split(key, 8 + 8 * n_layers))
    params = {
        "emb_w": nrm(next(keys), (in_dim, hidden_dim)),
        "emb_b": nrm(next(keys), (hidden_dim,)),
        "layers": [],
    }
    dims = [hidden_dim] * (n_layers - 1) + [out_dim]
    c_in = hidden_dim
    for c_out in dims:
        params["layers"].append({
            "wp": nrm(next(keys), (2, dim)),               # pseudo_proj Linear(2, dim)
            "bp": nrm(next(keys), (dim,)),
            "mu": nrm(next(keys), (K, dim), scale=0.5),    # GMM means
            "inv_sigma": 1.0 + nrm(next(keys), (K, dim)),  # GMM inverse sigmas
            "fc_w": nrm(next(keys), (c_in, K * c_out)),    # Linear(c_in, K*c_out, bias=False)
            "gamma": jnp.ones((c_out,), F32),              # BatchNorm1d weight
            "beta": jnp.zeros((c_out,), F32),              # BatchNorm1d bias
        })
        c_in = c_out
    return params


if __name__ == "__main__":
    # Small synthetic sizes consistent with net_params.
    in_dim, hidden_dim, out_dim = 8, 32, 32
    K, dim, n_layers = 3, 2, 3
    N, E = 24, 300   # E=300 with e_tile=256 & 2 partials: exercises init/accumulate/epilogue

    key = jax.random.PRNGKey(0)
    k_h, k_ps, k_src, k_dst, k_par = jax.random.split(key, 5)

    h = jax.random.normal(k_h, (N, in_dim), dtype=jnp.float32)
    pseudo = jax.random.uniform(k_ps, (E, 2), dtype=jnp.float32)   # e.g. 1/sqrt(deg) pairs
    src = jax.random.randint(k_src, (E,), 0, N)
    dst = jax.random.randint(k_dst, (E,), 0, N)

    params = init_params(k_par, in_dim, hidden_dim, out_dim, K, dim, n_layers)
    prep = prepare_params(params)   # padding/packing/casting hoisted out of forward

    out = monet_forward(h, pseudo, src, dst, prep,
                        residual=True, batch_norm=True,
                        e_tile=256, num_cores=2)
    out = jax.block_until_ready(out)

    assert out.shape == (N, out_dim)
    assert bool(jnp.all(jnp.isfinite(out)))
    print("KERNEL_OK")
</pallas_src>

<mosaic_0001>
module attributes {stable_mosaic.version = 11 : i64} {
  func.func @_linear_kernel(%arg0: i32, %arg1: memref<128x128xf32, #tpu.memory_space<vmem>>, %arg2: memref<128x128xbf16, #tpu.memory_space<vmem>>, %arg3: memref<1x128xf32, #tpu.memory_space<vmem>>, %arg4: memref<128x128xf32, #tpu.memory_space<vmem>>) attributes {dimension_semantics = [#tpu.dimension_semantics<parallel>], iteration_bounds = array<i64: 1>, scalar_prefetch = 0 : i64, scratch_operands = 0 : i64, tpu.core_type = #tpu.core_type<tc>, window_params = [{transform_indices = @transform_0, window_bounds = array<i64: 128, 128>}, {pipeline_mode = #tpu.pipeline_mode<synchronous>, transform_indices = @transform_1, window_bounds = array<i64: 128, 128>}, {pipeline_mode = #tpu.pipeline_mode<synchronous>, transform_indices = @transform_2, window_bounds = array<i64: 1, 128>}, {transform_indices = @transform_3, window_bounds = array<i64: 128, 128>}]} {
    %c0 = arith.constant 0 : index
    %c0_0 = arith.constant 0 : index
    %0 = vector.load %arg1[%c0, %c0_0] : memref<128x128xf32, #tpu.memory_space<vmem>>, vector<128x128xf32>
    %1 = arith.truncf %0 : vector<128x128xf32> to vector<128x128xbf16>
    %c0_1 = arith.constant 0 : index
    %c0_2 = arith.constant 0 : index
    %2 = vector.load %arg2[%c0_1, %c0_2] : memref<128x128xbf16, #tpu.memory_space<vmem>>, vector<128x128xbf16>
    %cst = arith.constant dense<0.000000e+00> : vector<128x128xf32>
    %3 = tpu.matmul %1, %2, %cst {dimension_numbers = #tpu.dot_dimension_numbers<[1], [0], [0], [1], [0, 0, 1, 1], [], []>} : vector<128x128xbf16>, vector<128x128xbf16>, vector<128x128xf32> -> vector<128x128xf32>
    %c0_3 = arith.constant 0 : index
    %c0_4 = arith.constant 0 : index
    %4 = vector.load %arg3[%c0_3, %c0_4] : memref<1x128xf32, #tpu.memory_space<vmem>>, vector<1x128xf32>
    %5 = vector.broadcast %4 : vector<1x128xf32> to vector<128x128xf32>
    %6 = arith.addf %3, %5 : vector<128x128xf32>
    %c0_5 = arith.constant 0 : index
    %c0_6 = arith.constant 0 : index
    %7 = vector.load %arg4[%c0_5, %c0_6] : memref<128x128xf32, #tpu.memory_space<vmem>>, vector<128x128xf32>
    tpu.vector_store %arg4[%c0_5, %c0_6], %6 {strides = array<i32>} : memref<128x128xf32, #tpu.memory_space<vmem>>, vector<128x128xf32>,
    return
  }
  func.func @transform_0(%arg0: i32) -> (i32, i32) {
    %c0_i32 = arith.constant 0 : i32
    %c0_i32_0 = arith.constant 0 : i32
    return %arg0, %c0_i32 : i32, i32
  }
  func.func @transform_1(%arg0: i32) -> (i32, i32) {
    %c0_i32 = arith.constant 0 : i32
    %c0_i32_0 = arith.constant 0 : i32
    %c0_i32_1 = arith.constant 0 : i32
    return %c0_i32, %c0_i32_0 : i32, i32
  }
  func.func @transform_2(%arg0: i32) -> (i32, i32) {
    %c0_i32 = arith.constant 0 : i32
    %c0_i32_0 = arith.constant 0 : i32
    %c0_i32_1 = arith.constant 0 : i32
    return %c0_i32, %c0_i32_0 : i32, i32
  }
  func.func @transform_3(%arg0: i32) -> (i32, i32) {
    %c0_i32 = arith.constant 0 : i32
    %c0_i32_0 = arith.constant 0 : i32
    return %arg0, %c0_i32 : i32, i32
  }
}

</mosaic_0001>

<bundles_post_ra>
// kernel: tpu_custom_call.1
= control target key start
LH: loop header
LB: loop body
LE: loop exit
PB: predicated region body
PF: predicated region fallthrough
CT: control target
= control target key end

     0   :  { %8 = vsyncpa [#allocation3], 0  ;;  %s469_s0 = inlined_call_operand.hbm [shape: f32[128,128], index: 0, kind: input, shape index: {}]   ;;  %s470_s1 = inlined_call_operand.hbm [shape: bf16[128,128], index: 1, kind: input, shape index: {}]   ;;  %s471_s2 = inlined_call_operand.vmem [shape: f32[1,128], index: 2, kind: input, shape index: {}]   ;;  %s472_s3 = inlined_call_operand.hbm [shape: f32[128,128], index: 3, kind: output, shape index: {}]  }
   0x1   :  { %9 = vsyncpa [#allocation6], 0 }
   0x2   :  { %10 = vsyncpa [#allocation4], 0  ;;  %s424_s12 = smov [#allocation2]  }
   0x3   :  { %s16_s13 = sshll.u32 %s424_s12, 4  ;;  %s17_s13 = int_to_ptr.vmem [resolvable:$true] %s16_s13 }
   0x4   :  { %s366_s14 = scalar_lea.vmem %s17_s13, 2048  ;;  %p371_p1 = scmp.lt.s32.totalorder %s17_s13, %s17_s13 }
   0x5   :  { %p367_p0 = scmp.ne.s32.totalorder %s17_s13, %s366_s14  ;;  %p372_p2 = scmp.lt.s32.totalorder %s366_s14, %s366_s14 }
   0x7   :  { %p373_p3 = por %p372_p2, %p371_p1 }
   0x9   :  { %p374_p4 = pnand %p373_p3, %p367_p0 }
   0xb   :  { %377 = shalt.err (!%p374_p4)
}
   0xc   :  { %s425_s15 = smov 128   ;;  %s426_s16 = smov 8  }
   0xd   :  { %22 = dma.hbm_to_vmem [thread:$0]  %s469_s0, 2048, %s17_s13, [#allocation3], %s425_s15, %s425_s15, %s426_s16  }
   0xe   :  { %s427_s19 = smov [#allocation5]  }
   0xf   :  { %s28_s20 = sshll.u32 %s427_s19, 4  ;;  %s29_s20 = int_to_ptr.vmem [resolvable:$true] %s28_s20 }
  0x10   :  { %s386_s21 = scalar_lea.vmem %s29_s20, 1024  ;;  %p391_p6 = scmp.lt.s32.totalorder %s29_s20, %s29_s20 }
  0x11   :  { %p387_p5 = scmp.ne.s32.totalorder %s29_s20, %s386_s21  ;;  %p392_p7 = scmp.lt.s32.totalorder %s386_s21, %s386_s21 }
  0x13   :  { %p393_p8 = por %p392_p7, %p391_p6 }
  0x15   :  { %p394_p9 = pnand %p393_p8, %p387_p5 }
  0x17   :  { %397 = shalt.err (!%p394_p9)
}
  0x18   :  { %s428_s22 = smov 64   ;;  %s429_s23 = smov 4  }
  0x19   :  { %34 = dma.hbm_to_vmem [thread:$0]  %s470_s1, 1024, %s29_s20, [#allocation6], %s428_s22, %s428_s22, %s429_s23  }
  0x1a   :  { %418 = dma.done.wait [#allocation3], 2048  }
  0x1b   :  { %419 = vsyncadd [#allocation3], 4294965248 }
  0x1c   :  { %420 = dma.done.wait [#allocation6], 1024  }
  0x1d   :  { %421 = vsyncadd [#allocation6], 4294966272  ;;  %v350_v0 = vld [vmem:[#allocation5 + $0x38] sm:$0xff]   ;;  %v351_v1 = vld [vmem:[#allocation5 + $0x30] sm:$0xff]  }
  0x1e   :  { %295 = vmatprep.subr.bf16.mxu0 %v350_v0  ;;  %327 = vmatprep.subr.bf16.mxu1 %v350_v0  ;;  %v352_v2 = vld [vmem:[#allocation5 + $0x28] sm:$0xff]   ;;  %v353_v3 = vld [vmem:[#allocation5 + $0x20] sm:$0xff]   ;;  %v354_v10 = vld [vmem:[#allocation5 + $0x18] sm:$0xff]  }
  0x1f   :  { %296 = vmatpush3.bf16.msra.mxu0 %v350_v0  ;;  %335 = vmatpush3.bf16.msra.mxu1 %v350_v0  ;;  %v44_v4 = vld [vmem:[#allocation2] sm:$0xff]  ;;  %v45_v5 = vld [vmem:[#allocation2 + $0x8] sm:$0xff]  ;;  %v355_v11 = vld [vmem:[#allocation5 + $0x10] sm:$0xff]  }
  0x20   :  { %297 = vmatprep.subr.bf16.mxu0 %v351_v1  ;;  %328 = vmatprep.subr.bf16.mxu1 %v351_v1  ;;  %v52_v6 = vld [vmem:[#allocation2 + $0x40] sm:$0xff]  ;;  %v60_v7 = vpack.c.bf16 %v45_v5, %v44_v4  ;;  %v53_v8 = vld [vmem:[#allocation2 + $0x48] sm:$0xff]  ;;  %v46_v14 = vld [vmem:[#allocation2 + $0x10] sm:$0xff] }
  0x21   :  { %v64_v9 = vpack.c.bf16 %v53_v8, %v52_v6  ;;  %v356_v12 = vld [vmem:[#allocation5 + $0x8] sm:$0xff]   ;;  %v357_v13 = vld [vmem:[#allocation5] sm:$0xff]   ;;  %v47_v15 = vld [vmem:[#allocation2 + $0x18] sm:$0xff] }
  0x22   :  { %311 = vmatprep.mubr.bf16.mxu0 %v60_v7  ;;  %v54_v16 = vld [vmem:[#allocation2 + $0x50] sm:$0xff]  ;;  %v55_v17 = vld [vmem:[#allocation2 + $0x58] sm:$0xff]  ;;  %v48_v18 = vld [vmem:[#allocation2 + $0x20] sm:$0xff]  ;;  %v61_v22 = vpack.c.bf16 %v47_v15, %v46_v14 }
  0x23   :  { %298 = vmatpush3.bf16.msra.mxu0 %v351_v1  ;;  %336 = vmatpush3.bf16.msra.mxu1 %v351_v1  ;;  %v49_v19 = vld [vmem:[#allocation2 + $0x28] sm:$0xff]  ;;  %v56_v20 = vld [vmem:[#allocation2 + $0x60] sm:$0xff]  ;;  %v65_v23 = vpack.c.bf16 %v55_v17, %v54_v16  ;;  %v50_v26 = vld [vmem:[#allocation2 + $0x30] sm:$0xff] }
  0x24   :  { %299 = vmatprep.subr.bf16.mxu0 %v352_v2  ;;  %329 = vmatprep.subr.bf16.mxu1 %v352_v2  ;;  %v57_v21 = vld [vmem:[#allocation2 + $0x68] sm:$0xff]  ;;  %v62_v24 = vpack.c.bf16 %v49_v19, %v48_v18  ;;  %v51_v27 = vld [vmem:[#allocation2 + $0x38] sm:$0xff]  ;;  %v58_v28 = vld [vmem:[#allocation2 + $0x70] sm:$0xff] }
  0x25   :  { %319 = vmatprep.mubr.bf16.mxu1 %v64_v9  ;;  %v66_v25 = vpack.c.bf16 %v57_v21, %v56_v20  ;;  %v59_v29 = vld [vmem:[#allocation2 + $0x78] sm:$0xff]  ;;  %v63_v30 = vpack.c.bf16 %v51_v27, %v50_v26  ;;  %v270_v32 = vld [vmem:[%s471_s2] ss:$0 sm:$0xff]  ;;  %s430_s2 = smov [#allocation7]  }
  0x26   :  { %v67_v31 = vpack.c.bf16 %v59_v29, %v58_v28  ;;  %s257_s26 = sshll.u32 %s430_s2, 4  ;;  %s258_s26 = int_to_ptr.vmem [resolvable:$true] %s257_s26 }
  0x27   :  { %300 = vmatpush3.bf16.msra.mxu0 %v352_v2  ;;  %337 = vmatpush3.bf16.msra.mxu1 %v352_v2  ;;  %s398_s27 = scalar_lea.vmem %s258_s26, 2048  ;;  %p403_p11 = scmp.lt.s32.totalorder %s258_s26, %s258_s26 }
  0x28   :  { %301 = vmatprep.subr.bf16.mxu0 %v353_v3  ;;  %330 = vmatprep.subr.bf16.mxu1 %v353_v3  ;;  %p399_p10 = scmp.ne.s32.totalorder %s258_s26, %s398_s27  ;;  %p404_p12 = scmp.lt.s32.totalorder %s398_s27, %s398_s27 }
  0x2a   :  { %p405_p13 = por %p404_p12, %p403_p11 }
  0x2b   :  { %302 = vmatpush3.bf16.msra.mxu0 %v353_v3  ;;  %338 = vmatpush3.bf16.msra.mxu1 %v353_v3 }
  0x2c   :  { %303 = vmatprep.subr.bf16.mxu0 %v354_v10  ;;  %331 = vmatprep.subr.bf16.mxu1 %v354_v10  ;;  %p406_p0 = pnand %p405_p13, %p399_p10 }
  0x2f   :  { %304 = vmatpush3.bf16.msra.mxu0 %v354_v10  ;;  %339 = vmatpush3.bf16.msra.mxu1 %v354_v10 }
  0x30   :  { %305 = vmatprep.subr.bf16.mxu0 %v355_v11  ;;  %332 = vmatprep.subr.bf16.mxu1 %v355_v11 }
  0x33   :  { %306 = vmatpush3.bf16.msra.mxu0 %v355_v11  ;;  %340 = vmatpush3.bf16.msra.mxu1 %v355_v11 }
  0x34   :  { %307 = vmatprep.subr.bf16.mxu0 %v356_v12  ;;  %333 = vmatprep.subr.bf16.mxu1 %v356_v12 }
  0x37   :  { %308 = vmatpush3.bf16.msra.mxu0 %v356_v12  ;;  %341 = vmatpush3.bf16.msra.mxu1 %v356_v12 }
  0x38   :  { %309 = vmatprep.subr.bf16.mxu0 %v357_v13  ;;  %334 = vmatprep.subr.bf16.mxu1 %v357_v13 }
  0x3b   :  { %310 = vmatpush3.bf16.msra.mxu0 %v357_v13  ;;  %342 = vmatpush3.bf16.msra.mxu1 %v357_v13 }
  0x3e   :  { %312 = vmatmul.mubr.bf16.vlgmr.msra.gmra.mxu0 %v61_v22  ;;  %320 = vmatmul.mubr.bf16.vlgmr.msra.gmra.mxu1 %v65_v23 }
  0x3f   :  { %315 = vmatprep.mubr.bf16.mxu0 %v62_v24  ;;  %323 = vmatprep.mubr.bf16.mxu1 %v66_v25 }
  0x46   :  { %316 = vmatmul.mubr.bf16.gmra.mxu0 %v63_v30  ;;  %324 = vmatmul.mubr.bf16.gmra.mxu1 %v67_v31 }
  0xfe   :  { %v313_v33 = vpop.f32.mrf.mxu0  ;;  %v321_v34 = vpop.f32.mrf.mxu1 }
  0xff   :  { %v182_v35 = vadd.f32 %v313_v33, %v270_v32  ;;  %v214_v36 = vadd.f32 %v321_v34, %v270_v32 }
 0x100   :  { %v173_v37 = vpop.f32.mrf.mxu0  ;;  %v205_v38 = vpop.f32.mrf.mxu1 }
 0x101   :  { %238 = vst [vmem:[#allocation7 + $0x10] sm:$0xff] %v182_v35  ;;  %246 = vst [vmem:[#allocation7 + $0x50] sm:$0xff] %v214_v36  ;;  %v174_v39 = vadd.f32 %v270_v32, %v173_v37  ;;  %v206_v40 = vadd.f32 %v270_v32, %v205_v38 }
 0x102   :  { %v314_v41 = vpop.f32.mrf.mxu0  ;;  %v322_v42 = vpop.f32.mrf.mxu1 }
 0x103   :  { %236 = vst [vmem:[#allocation7] sm:$0xff] %v174_v39  ;;  %244 = vst [vmem:[#allocation7 + $0x40] sm:$0xff] %v206_v40  ;;  %v185_v43 = vadd.f32 %v314_v41, %v270_v32  ;;  %v217_v44 = vadd.f32 %v322_v42, %v270_v32 }
 0x104   :  { %v176_v45 = vpop.f32.mrf.mxu0  ;;  %v208_v46 = vpop.f32.mrf.mxu1 }
 0x105   :  { %239 = vst [vmem:[#allocation7 + $0x18] sm:$0xff] %v185_v43  ;;  %247 = vst [vmem:[#allocation7 + $0x58] sm:$0xff] %v217_v44  ;;  %v177_v47 = vadd.f32 %v270_v32, %v176_v45  ;;  %v209_v48 = vadd.f32 %v270_v32, %v208_v46 }
 0x106   :  { %v317_v49 = vpop.f32.mrf.mxu0  ;;  %v325_v50 = vpop.f32.mrf.mxu1 }
 0x107   :  { %237 = vst [vmem:[#allocation7 + $0x8] sm:$0xff] %v177_v47  ;;  %245 = vst [vmem:[#allocation7 + $0x48] sm:$0xff] %v209_v48  ;;  %v198_v51 = vadd.f32 %v317_v49, %v270_v32  ;;  %v230_v52 = vadd.f32 %v325_v50, %v270_v32 }
 0x108   :  { %v189_v53 = vpop.f32.mrf.mxu0  ;;  %v221_v54 = vpop.f32.mrf.mxu1 }
 0x109   :  { %242 = vst [vmem:[#allocation7 + $0x30] sm:$0xff] %v198_v51  ;;  %250 = vst [vmem:[#allocation7 + $0x70] sm:$0xff] %v230_v52  ;;  %v190_v55 = vadd.f32 %v270_v32, %v189_v53  ;;  %v222_v56 = vadd.f32 %v270_v32, %v221_v54 }
 0x10a   :  { %v318_v57 = vpop.f32.mrf.mxu0  ;;  %v326_v58 = vpop.f32.mrf.mxu1 }
 0x10b   :  { %240 = vst [vmem:[#allocation7 + $0x20] sm:$0xff] %v190_v55  ;;  %248 = vst [vmem:[#allocation7 + $0x60] sm:$0xff] %v222_v56  ;;  %v201_v59 = vadd.f32 %v318_v57, %v270_v32  ;;  %v233_v60 = vadd.f32 %v326_v58, %v270_v32 }
 0x10c   :  { %v192_v61 = vpop.f32.mrf.mxu0  ;;  %v224_v62 = vpop.f32.mrf.mxu1 }
 0x10d   :  { %243 = vst [vmem:[#allocation7 + $0x38] sm:$0xff] %v201_v59  ;;  %251 = vst [vmem:[#allocation7 + $0x78] sm:$0xff] %v233_v60  ;;  %v193_v63 = vadd.f32 %v270_v32, %v192_v61  ;;  %v225_v0 = vadd.f32 %v270_v32, %v224_v62 }
 0x10f   :  { %241 = vst [vmem:[#allocation7 + $0x28] sm:$0xff] %v193_v63  ;;  %249 = vst [vmem:[#allocation7 + $0x68] sm:$0xff] %v225_v0 }
 0x110   :  { %409 = shalt.err (!%p406_p0)
}
 0x111   :  { %263 = dma.vmem_to_hbm [thread:$0]  %s258_s26, 2048, %s472_s3, [#allocation4], %s425_s15, %s425_s15, %s426_s16  }
 0x112   :  { %422 = dma.done.wait [#allocation4], 2048  }
 0x113   :  { %423 = vsyncadd [#allocation4], 4294965248 }
 0x114   :  { %267 = vsyncpa [#allocation3], 1 }
 0x115   :  { %268 = vsyncpa [#allocation6], 1 }
 0x116   :  { %269 = vsyncpa [#allocation4], 1 }

</bundles_post_ra>
